<compile_context>
chip_gen: v5e
topology: v5e:2x2
jax: 0.10.0
libtpu: 0.0.40
codegen_flags: <defaults>
</compile_context>

<pallas_src>
import jax
import jax.numpy as jnp
from jax.experimental import pallas as pl
from jax.experimental.pallas import tpu as pltpu


def _num_tensorcores() -> int:
    """Best-effort TensorCore-per-chip count (1 on v5e/v6e, 2 on v7x/v5p/v4)."""
    try:
        info = pltpu.get_tpu_info()
        for name in ("num_cores", "core_count", "num_tensorcores", "tensorcore_count",
                     "cores_per_chip"):
            v = getattr(info, name, None)
            if isinstance(v, int) and v >= 1:
                return v
    except Exception:
        pass
    try:
        kind = str(getattr(jax.devices()[0], "device_kind", "")).lower()
        if any(k in kind for k in ("v7", "7x", "v5p", "v4")):
            return 2
    except Exception:
        pass
    return 1


def _make_kernel(n_valid_rows: int, need_row_mask: bool):
    """Grid = (n_par, steps). Accumulates masked per-element losses into an (8, C) f32 vector
    accumulator; writes one (8, C) partial per parallel slice at the last step."""

    def kernel(x_ref, t_ref, pw_ref, out_ref, acc_ref):
        i = pl.program_id(1)

        @pl.when(i == 0)
        def _():
            acc_ref[...] = jnp.zeros_like(acc_ref)

        x = x_ref[...].astype(jnp.float32)          # (tile_rows, C)
        t = t_ref[...].astype(jnp.float32)          # (tile_rows, C)
        pw = pw_ref[...].astype(jnp.float32)        # (1, C) -> broadcast over rows

        # numerically stable softplus(x); softplus(-x) = softplus(x) - x
        sp_pos = jnp.maximum(x, 0.0) + jnp.log1p(jnp.exp(-jnp.abs(x)))   # EUP: exp, log
        pwt = pw * t
        # pw*t*softplus(-x) + (1-t)*softplus(x) == sp_pos*(pw*t + 1 - t) - (pw*t)*x
        per_elem = sp_pos * (pwt + (1.0 - t)) - pwt * x

        mask = t >= 0.0                              # unannotated entries (t == -1) drop out
        if need_row_mask:
            # Ragged last block / fully out-of-bounds blocks: Pallas OOB block contents are
            # unspecified, so mask by global row index (cheap VPU compare).
            tr = x.shape[0]
            base = (pl.program_id(0) * pl.num_programs(1) + i) * tr
            row = base + jax.lax.broadcasted_iota(jnp.int32, x.shape, 0)
            mask = mask & (row < n_valid_rows)
        masked = jnp.where(mask, per_elem, 0.0)

        # Reduce the tile down to 8 sublanes with plain vector adds (no cross-lane XLU reduce,
        # no scalar RMW) and accumulate into the persistent vector accumulator.
        tr, c = masked.shape
        acc_ref[...] += masked.reshape(tr // 8, 8, c).sum(axis=0)

        @pl.when(i == pl.num_programs(1) - 1)
        def _():
            out_ref[0] = acc_ref[...]

    return kernel


def bce_logits_loss(outputs, targets, pos_weight=None, *, n_par=None,
                    vmem_budget_bytes=24 * 1024 * 1024):
    """Masked BCE-with-logits loss, mean over all N*C elements. Returns a scalar f32."""
    N, C = outputs.shape
    n_elem = N * C

    if n_par is None:
        n_par = _num_tensorcores()

    # pos_weight as a (1, C) f32 row -- no padding of any kind.
    if pos_weight is None:
        pw = jnp.ones((1, C), dtype=jnp.float32)
    else:
        pw = jnp.asarray(pos_weight, dtype=jnp.float32).reshape(1, C)

    x_isz = jnp.dtype(outputs.dtype).itemsize
    t_isz = jnp.dtype(targets.dtype).itemsize

    # ---- tile sizing ------------------------------------------------------------------
    # HBM traffic per row is C*(x_isz+t_isz), but the VMEM footprint is lane-padded to a
    # multiple of 128, and the elementwise chain keeps ~5 whole-tile f32 temporaries live.
    lanes_vmem = ((C + 127) // 128) * 128
    min_rows = 8 * (4 // min(x_isz, t_isz, 4))        # 8 / 16 / 32 for f32 / bf16 / int8
    row_bytes = lanes_vmem * (2 * (x_isz + t_isz) + 5 * 4)   # 2x double-buffered inputs + temps
    max_rows = max(min_rows, (vmem_budget_bytes // row_bytes) // min_rows * min_rows)

    rows_per_core = -(-N // n_par)                               # ceil(N / n_par)
    tile_rows = min(max_rows, -(-rows_per_core // min_rows) * min_rows)
    assert tile_rows % 8 == 0
    steps = -(-rows_per_core // tile_rows)                       # grid steps per core
    need_row_mask = (n_par * steps * tile_rows) != N             # ragged coverage?

    bytes_accessed = int(N * C * (x_isz + t_isz) + C * 4 + n_par * 8 * C * 4)

    partials = pl.pallas_call(
        _make_kernel(N, need_row_mask),
        out_shape=jax.ShapeDtypeStruct((n_par, 8, C), jnp.float32),
        grid_spec=pltpu.PrefetchScalarGridSpec(
            num_scalar_prefetch=0,
            grid=(n_par, steps),
            in_specs=[
                pl.BlockSpec((tile_rows, C), lambda p, i: (p * steps + i, 0)),   # outputs
                pl.BlockSpec((tile_rows, C), lambda p, i: (p * steps + i, 0)),   # targets
                pl.BlockSpec((1, C), lambda p, i: (0, 0)),                       # pos_weight
            ],
            out_specs=pl.BlockSpec((1, 8, C), lambda p, i: (p, 0, 0)),           # partials
            scratch_shapes=[pltpu.VMEM((8, C), jnp.float32)],                    # accumulator
        ),
        compiler_params=pltpu.CompilerParams(
            dimension_semantics=("parallel", "arbitrary"),
            vmem_limit_bytes=32 * 1024 * 1024,      # <= physical VMEM on v5e/v6e/v7x
        ),
        cost_estimate=pl.CostEstimate(
            flops=14 * N * C,
            transcendentals=2 * N * C,
            bytes_accessed=bytes_accessed,
        ),
    )(outputs, targets, pw)

    # Single final cross-lane reduction + mean scale, outside the hot loop.
    return jnp.sum(partials) / float(n_elem)


def _reference(outputs, targets, pos_weight):
    x = outputs.astype(jnp.float32)
    t = targets.astype(jnp.float32)
    if pos_weight is None:
        pw = jnp.ones((1, x.shape[1]), jnp.float32)
    else:
        pw = jnp.asarray(pos_weight, jnp.float32).reshape(1, -1)
    sp_pos = jax.nn.softplus(x)
    sp_neg = jax.nn.softplus(-x)
    per = pw * t * sp_neg + (1.0 - t) * sp_pos
    mask = (t >= 0.0).astype(jnp.float32)
    return jnp.mean(mask * per)


if __name__ == "__main__":
    key = jax.random.PRNGKey(0)
    k1, k2, k3, k4, k5, k6 = jax.random.split(key, 6)

    # ---- case 1: grid exactly covers the batch, C not a multiple of 128 ----------------
    N, C = 16, 12
    outputs = jax.random.normal(k1, (N, C), dtype=jnp.float32) * 2.0
    labels = (jax.random.uniform(k2, (N, C)) > 0.5).astype(jnp.float32)
    unannotated = jax.random.uniform(k3, (N, C)) < 0.2
    targets = jnp.where(unannotated, -1.0, labels)
    pos_weight = 0.5 + jnp.arange(C, dtype=jnp.float32) / C    # (n_classes,) in [0.5, 1.5)

    loss = jax.block_until_ready(bce_logits_loss(outputs, targets, pos_weight))
    ref = _reference(outputs, targets, pos_weight)
    assert jnp.allclose(loss, ref, rtol=1e-5, atol=1e-5), (loss, ref)

    # ---- case 2: ragged batch (row mask path), no pos_weight, forced n_par=2 -----------
    N2, C2 = 13, 7
    outputs2 = jax.random.normal(k4, (N2, C2), dtype=jnp.float32) * 3.0
    labels2 = (jax.random.uniform(k5, (N2, C2)) > 0.5).astype(jnp.float32)
    targets2 = jnp.where(jax.random.uniform(k6, (N2, C2)) < 0.3, -1.0, labels2)

    loss2 = jax.block_until_ready(bce_logits_loss(outputs2, targets2, None, n_par=2))
    ref2 = _reference(outputs2, targets2, None)
    assert jnp.allclose(loss2, ref2, rtol=1e-5, atol=1e-5), (loss2, ref2)

    print("KERNEL_OK")
</pallas_src>

<mosaic_0001>
module attributes {stable_mosaic.version = 11 : i64} {
  func.func @kernel(%arg0: i32, %arg1: i32, %arg2: memref<16x12xf32, #tpu.memory_space<vmem>>, %arg3: memref<16x12xf32, #tpu.memory_space<vmem>>, %arg4: memref<1x12xf32, #tpu.memory_space<vmem>>, %arg5: memref<1x8x12xf32, #tpu.memory_space<vmem>>, %arg6: memref<8x12xf32, #tpu.memory_space<vmem>>) attributes {dimension_semantics = [#tpu.dimension_semantics<parallel>, #tpu.dimension_semantics<arbitrary>], iteration_bounds = array<i64: 1, 1>, scalar_prefetch = 0 : i64, scratch_operands = 1 : i64, tpu.core_type = #tpu.core_type<tc>, window_params = [{transform_indices = @transform_0, window_bounds = array<i64: 16, 12>}, {transform_indices = @transform_1, window_bounds = array<i64: 16, 12>}, {pipeline_mode = #tpu.pipeline_mode<synchronous>, transform_indices = @transform_2, window_bounds = array<i64: 1, 12>}, {transform_indices = @transform_3, window_bounds = array<i64: 1, 8, 12>}]} {
    %c0_i32 = arith.constant 0 : i32
    %0 = arith.cmpi eq, %arg1, %c0_i32 : i32
    %1 = arith.extui %0 : i1 to i32
    %c0_i32_0 = arith.constant 0 : i32
    %2 = arith.cmpi ne, %1, %c0_i32_0 : i32
    scf.if %2 {
      %cst_17 = arith.constant 0.000000e+00 : f32
      %34 = vector.broadcast %cst_17 : f32 to vector<8x12xf32>
      %c0_18 = arith.constant 0 : index
      %c0_19 = arith.constant 0 : index
      %35 = vector.load %arg6[%c0_18, %c0_19] : memref<8x12xf32, #tpu.memory_space<vmem>>, vector<8x12xf32>
      tpu.vector_store %arg6[%c0_18, %c0_19], %34 {strides = array<i32>} : memref<8x12xf32, #tpu.memory_space<vmem>>, vector<8x12xf32>,
    } else {
    }
    %c0 = arith.constant 0 : index
    %c0_1 = arith.constant 0 : index
    %3 = vector.load %arg2[%c0, %c0_1] : memref<16x12xf32, #tpu.memory_space<vmem>>, vector<16x12xf32>
    %c0_2 = arith.constant 0 : index
    %c0_3 = arith.constant 0 : index
    %4 = vector.load %arg3[%c0_2, %c0_3] : memref<16x12xf32, #tpu.memory_space<vmem>>, vector<16x12xf32>
    %c0_4 = arith.constant 0 : index
    %c0_5 = arith.constant 0 : index
    %5 = vector.load %arg4[%c0_4, %c0_5] : memref<1x12xf32, #tpu.memory_space<vmem>>, vector<1x12xf32>
    %cst = arith.constant 0.000000e+00 : f32
    %6 = vector.broadcast %cst : f32 to vector<16x12xf32>
    %7 = arith.maximumf %3, %6 : vector<16x12xf32>
    %8 = math.absf %3 : vector<16x12xf32>
    %cst_6 = arith.constant 0.000000e+00 : f32
    %9 = vector.broadcast %cst_6 : f32 to vector<16x12xf32>
    %10 = arith.subf %9, %8 : vector<16x12xf32>
    %11 = math.exp %10 : vector<16x12xf32>
    %12 = math.log1p %11 : vector<16x12xf32>
    %13 = arith.addf %7, %12 : vector<16x12xf32>
    %14 = vector.broadcast %5 : vector<1x12xf32> to vector<16x12xf32>
    %15 = arith.mulf %14, %4 : vector<16x12xf32>
    %cst_7 = arith.constant 1.000000e+00 : f32
    %16 = vector.broadcast %cst_7 : f32 to vector<16x12xf32>
    %17 = arith.subf %16, %4 : vector<16x12xf32>
    %18 = arith.addf %15, %17 : vector<16x12xf32>
    %19 = arith.mulf %13, %18 : vector<16x12xf32>
    %20 = arith.mulf %15, %3 : vector<16x12xf32>
    %21 = arith.subf %19, %20 : vector<16x12xf32>
    %cst_8 = arith.constant 0.000000e+00 : f32
    %22 = vector.broadcast %cst_8 : f32 to vector<16x12xf32>
    %23 = arith.cmpf oge, %4, %22 : vector<16x12xf32>
    %cst_9 = arith.constant 0.000000e+00 : f32
    %24 = vector.broadcast %cst_9 : f32 to vector<16x12xf32>
    %25 = arith.select %23, %21, %24 : vector<16x12xi1>, vector<16x12xf32>
    %c0_10 = arith.constant 0 : index
    %c0_11 = arith.constant 0 : index
    %26 = vector.load %arg6[%c0_10, %c0_11] : memref<8x12xf32, #tpu.memory_space<vmem>>, vector<8x12xf32>
    %27 = vector.shape_cast %25 : vector<16x12xf32> to vector<2x8x12xf32>
    %cst_12 = arith.constant dense<0.000000e+00> : vector<8x12xf32>
    %28 = vector.multi_reduction <add>, %27, %cst_12 [0] : vector<2x8x12xf32> to vector<8x12xf32>
    %29 = arith.addf %26, %28 : vector<8x12xf32>
    %c0_13 = arith.constant 0 : index
    %c0_14 = arith.constant 0 : index
    %30 = vector.load %arg6[%c0_13, %c0_14] : memref<8x12xf32, #tpu.memory_space<vmem>>, vector<8x12xf32>
    tpu.vector_store %arg6[%c0_13, %c0_14], %29 {strides = array<i32>} : memref<8x12xf32, #tpu.memory_space<vmem>>, vector<8x12xf32>,
    %c0_i32_15 = arith.constant 0 : i32
    %31 = arith.cmpi eq, %arg1, %c0_i32_15 : i32
    %32 = arith.extui %31 : i1 to i32
    %c0_i32_16 = arith.constant 0 : i32
    %33 = arith.cmpi ne, %32, %c0_i32_16 : i32
    scf.if %33 {
      %c0_17 = arith.constant 0 : index
      %c0_18 = arith.constant 0 : index
      %34 = vector.load %arg6[%c0_17, %c0_18] : memref<8x12xf32, #tpu.memory_space<vmem>>, vector<8x12xf32>
      %c0_19 = arith.constant 0 : index
      %c0_20 = arith.constant 0 : index
      %c0_21 = arith.constant 0 : index
      %35 = vector.load %arg5[%c0_19, %c0_20, %c0_21] : memref<1x8x12xf32, #tpu.memory_space<vmem>>, vector<1x8x12xf32>
      %36 = vector.shape_cast %35 : vector<1x8x12xf32> to vector<8x12xf32>
      %37 = vector.shape_cast %34 : vector<8x12xf32> to vector<1x8x12xf32>
      tpu.vector_store %arg5[%c0_19, %c0_20, %c0_21], %37 {strides = array<i32>} : memref<1x8x12xf32, #tpu.memory_space<vmem>>, vector<1x8x12xf32>,
    } else {
    }
    return
  }
  func.func @transform_0(%arg0: i32, %arg1: i32) -> (i32, i32) {
    %c1_i32 = arith.constant 1 : i32
    %0 = arith.muli %arg0, %c1_i32 : i32
    %1 = arith.addi %0, %arg1 : i32
    %c0_i32 = arith.constant 0 : i32
    %c0_i32_0 = arith.constant 0 : i32
    return %1, %c0_i32 : i32, i32
  }
  func.func @transform_1(%arg0: i32, %arg1: i32) -> (i32, i32) {
    %c1_i32 = arith.constant 1 : i32
    %0 = arith.muli %arg0, %c1_i32 : i32
    %1 = arith.addi %0, %arg1 : i32
    %c0_i32 = arith.constant 0 : i32
    %c0_i32_0 = arith.constant 0 : i32
    return %1, %c0_i32 : i32, i32
  }
  func.func @transform_2(%arg0: i32, %arg1: i32) -> (i32, i32) {
    %c0_i32 = arith.constant 0 : i32
    %c0_i32_0 = arith.constant 0 : i32
    %c0_i32_1 = arith.constant 0 : i32
    return %c0_i32, %c0_i32_0 : i32, i32
  }
  func.func @transform_3(%arg0: i32, %arg1: i32) -> (i32, i32, i32) {
    %c0_i32 = arith.constant 0 : i32
    %c0_i32_0 = arith.constant 0 : i32
    %c0_i32_1 = arith.constant 0 : i32
    return %arg0, %c0_i32, %c0_i32_0 : i32, i32, i32
  }
}

</mosaic_0001>

<bundles_post_ra>
// kernel: tpu_custom_call.1
= control target key start
LH: loop header
LB: loop body
LE: loop exit
PB: predicated region body
PF: predicated region fallthrough
CT: control target
= control target key end

     0   :  { %8 = vsyncpa [#allocation4], 0  ;;  %s285_s0 = inlined_call_operand.hbm [shape: f32[16,12], index: 0, kind: input, shape index: {}]   ;;  %s286_s1 = inlined_call_operand.hbm [shape: f32[16,12], index: 1, kind: input, shape index: {}]   ;;  %s287_s2 = inlined_call_operand.vmem [shape: f32[1,12], index: 2, kind: input, shape index: {}]   ;;  %s288_s3 = inlined_call_operand.hbm [shape: f32[1,8,12], index: 3, kind: output, shape index: {}]  }
   0x1   :  { %9 = vsyncpa [#allocation7], 0 }
   0x2   :  { %10 = vsyncpa [#allocation5], 0  ;;  %s19_s14 = sshll.u32 %s285_s0, 4  ;;  %s242_s15 = smov [#allocation3]   ;;  %s20_s14 = int_to_ptr.hbm [resolvable:$true] %s19_s14 }
   0x3   :  { %s21_s16 = sshll.u32 %s242_s15, 4  ;;  %s36_s19 = sshll.u32 %s286_s1, 4  ;;  %s22_s16 = int_to_ptr.vmem [resolvable:$true] %s21_s16  ;;  %s37_s19 = int_to_ptr.hbm [resolvable:$true] %s36_s19 }
   0x4   :  { %s243_s20 = smov 128   ;;  %s244_s21 = smov 8  }
   0x5   :  { %27 = dma.hbm_to_vmem [thread:$0]  %s20_s14, 256, %s22_s16, [#allocation4], %s243_s20, %s243_s20, %s244_s21  }
   0x6   :  { %s245_s22 = smov [#allocation6]  }
   0x7   :  { %s38_s23 = sshll.u32 %s245_s22, 4  ;;  %s39_s23 = int_to_ptr.vmem [resolvable:$true] %s38_s23 }
   0x8   :  { %44 = dma.hbm_to_vmem [thread:$0]  %s37_s19, 256, %s39_s23, [#allocation7], %s243_s20, %s243_s20, %s244_s21  }
   0x9   :  { %236 = dma.done.wait [#allocation4], 256  }
   0xa   :  { %237 = vsyncadd [#allocation4], 4294967040 }
   0xb   :  { %238 = dma.done.wait [#allocation7], 256  }
   0xc   :  { %239 = vsyncadd [#allocation7], 4294967040  ;;  %vm63_vm0 = vcmask 97280   ;;  %v246_v0 = vmov 0.0   ;;  %v65_v1 = vld [vmem:[#allocation3] sm:$0xff]  ;;  %v66_v2 = vld [vmem:[#allocation3 + $0x8] sm:$0xff] }
   0xd   :  { %64 = vst.msk [vmem:[#allocation2] sm:$0xff] %vm63_vm0, %v246_v0  ;;  %v72_v3 = vand.u32 2147483647, %v65_v1  ;;  %v73_v4 = vand.u32 2147483647, %v66_v2  ;;  %v67_v16 = vld [vmem:[#allocation6] sm:$0xff] }
   0xe   :  { %v155_v15 = vld [vmem:[%s287_s2] ss:$0 sm:$0xff]  ;;  %v105_v23 = vsub.f32 1.0, %v67_v16  ;;  %v70_v28 = vmax.f32 %v65_v1, 0.0  ;;  %v71_v31 = vmax.f32 %v66_v2, 0.0  ;;  %vm115_vm3 = vcmp.ge.f32.partialorder %v67_v16, 0.0 }
   0xf   :  { %v74_v5 = vsub.f32 0.0, %v72_v3  ;;  %v75_v6 = vsub.f32 0.0, %v73_v4  ;;  %v68_v18 = vld [vmem:[#allocation6 + $0x8] sm:$0xff]  ;;  %v103_v22 = vmul.f32 %v155_v15, %v67_v16  ;;  %s247_s2 = smov [#allocation8]   ;;  %s138_s27 = sshll.u32 %s288_s3, 4  ;;  %s139_s27 = int_to_ptr.hbm [resolvable:$true] %s138_s27 }
  0x10   :  { %v104_v25 = vmul.f32 %v155_v15, %v68_v18  ;;  %v106_v26 = vsub.f32 1.0, %v68_v18  ;;  %vm116_vm4 = vcmp.ge.f32.partialorder %v68_v18, 0.0  ;;  %s136_s24 = sshll.u32 %s247_s2, 4  ;;  %s137_s24 = int_to_ptr.vmem [resolvable:$true] %s136_s24 }
  0x11   :  { %v76_v7 = vmul.f32 1.442695, %v74_v5  ;;  %v78_v8 = vmul.f32 1.442695, %v75_v6  ;;  %v107_v34 = vadd.f32 %v105_v23, %v103_v22  ;;  %v111_v39 = vmul.f32 %v103_v22, %v65_v1 }
  0x12   :  { %v108_v36 = vadd.f32 %v106_v26, %v104_v25  ;;  %v112_v41 = vmul.f32 %v104_v25, %v66_v2 }
  0x13   :  { %156 = vpow2.f32 %v76_v7 }
  0x14   :  { %158 = vpow2.f32 %v78_v8  ;;  %v119_v49 = vld [vmem:[#allocation2] sm:$0xff] }
  0x19   :  { %v157_v9 = vpop.eup %156 }
  0x1a   :  { %v159_v10 = vpop.eup %158  ;;  %v80_v11 = vadd.f32 1.0, %v157_v9  ;;  %v83_v12 = vmul.f32 -0.5, %v157_v9  ;;  %v86_v19 = vand.u32 2147483647, %v157_v9 }
  0x1b   :  { %v89_v13 = vadd.f32 1.0, %v159_v10  ;;  %v92_v14 = vmul.f32 -0.5, %v159_v10  ;;  %v95_v21 = vand.u32 2147483647, %v159_v10 }
  0x1c   :  { %160 = vlog2.f32 %v80_v11  ;;  %v84_v17 = vadd.f32 1.0, %v83_v12  ;;  %vm87_vm1 = vcmp.lt.f32.partialorder %v86_v19, 0.0004427343 }
  0x1d   :  { %162 = vlog2.f32 %v89_v13  ;;  %v93_v20 = vadd.f32 1.0, %v92_v14  ;;  %vm96_vm2 = vcmp.lt.f32.partialorder %v95_v21, 0.0004427343 }
  0x1e   :  { %v85_v24 = vmul.f32 %v157_v9, %v84_v17 }
  0x1f   :  { %v94_v29 = vmul.f32 %v159_v10, %v93_v20 }
  0x22   :  { %v161_v27 = vpop.eup %160 }
  0x23   :  { %v163_v30 = vpop.eup %162  ;;  %v82_v32 = vmul.f32 0.6931472, %v161_v27 }
  0x24   :  { %v91_v33 = vmul.f32 0.6931472, %v163_v30 }
  0x25   :  { %v88_v35 = vsel %vm87_vm1, %v85_v24, %v82_v32 }
  0x26   :  { %v97_v37 = vsel %vm96_vm2, %v94_v29, %v91_v33  ;;  %v98_v38 = vadd.f32 %v88_v35, %v70_v28 }
  0x27   :  { %v99_v40 = vadd.f32 %v97_v37, %v71_v31 }
  0x28   :  { %v109_v42 = vmul.f32 %v107_v34, %v98_v38 }
  0x29   :  { %v110_v43 = vmul.f32 %v108_v36, %v99_v40 }
  0x2a   :  { %v113_v44 = vsub.f32 %v109_v42, %v111_v39 }
  0x2b   :  { %v114_v45 = vsub.f32 %v110_v43, %v112_v41 }
  0x2c   :  { %v117_v46 = vsel %vm115_vm3, %v113_v44, 0.0 }
  0x2d   :  { %v118_v47 = vsel %vm116_vm4, %v114_v45, 0.0  ;;  %v121_v48 = vsel %vm63_vm0, %v117_v46, 0.0 }
  0x2e   :  { %v122_v50 = vsel %vm63_vm0, %v118_v47, 0.0 }
  0x2f   :  { %v123_v51 = vadd.f32 %v122_v50, %v121_v48 }
  0x31   :  { %v124_v52 = vadd.f32 %v123_v51, %v119_v49 }
  0x33   :  { %125 = vst.msk [vmem:[#allocation2] sm:$0xff] %vm63_vm0, %v124_v52 }
  0x3a   :  { %v129_v53 = vld [vmem:[#allocation2] sm:$0xff] }
  0x3b   :  { %130 = vst.msk [vmem:[#allocation8] sm:$0xff] %vm63_vm0, %v129_v53 }
  0x3c   :  { %141 = dma.vmem_to_hbm [thread:$0]  %s137_s24, 128, %s139_s27, [#allocation5]  }
  0x3d   :  { %240 = dma.done.wait [#allocation5], 128  }
  0x3e   :  { %241 = vsyncadd [#allocation5], 4294967168 }
  0x3f   :  { %146 = vsyncpa [#allocation4], 1 }
  0x40   :  { %147 = vsyncpa [#allocation7], 1 }
  0x41   :  { %148 = vsyncpa [#allocation5], 1 }

</bundles_post_ra>
